<compile_context>
chip_gen: v5e
topology: v5e:2x2
jax: 0.10.0
libtpu: 0.0.40
codegen_flags: <defaults>
</compile_context>

<pallas_src>
import math
from functools import partial

import jax
import jax.numpy as jnp
from jax.experimental import pallas as pl
from jax.experimental.pallas import tpu as pltpu

NUM_LAYERS = 6
BN_EPS = 1e-5


def _round_up(x, m):
    return ((x + m - 1) // m) * m


# ----------------------------------------------------------------------------
# Fused 6-layer GCN encoder kernel (gridless, everything resident in VMEM).
# ----------------------------------------------------------------------------
def _make_kernel(in_features, kdim, out_features, num_layers):
    def fused_gnn_kernel(x_ref, adj_ref, w_ref, bgb_ref, out_ref):
        # x:   (N, in_features)  raw node features (f32, no padding)
        # adj: (N, N)            symmetric-normalized adjacency (f32)
        # w:   (L, kdim, FPAD)   bf16 weights (x @ W layout); pad rows/cols 0
        # bgb: (L, 8, FPAD)      f32; row0=bias, row1=gamma, row2=beta, rest 0
        # out: (N, out_features) f32
        n = x_ref.shape[0]
        inv_n = 1.0 / n
        adj = adj_ref[...]                              # (N, N) f32
        residual = None
        x = None

        for l in range(num_layers):                     # statically unrolled
            bgb = bgb_ref[l]                            # (8, FPAD) f32
            b = bgb[0:1, :]                             # (1, FPAD)
            gamma = bgb[1:2, :]
            beta = bgb[2:3, :]

            if l == 0:
                # Layer 0: contract only the real feature columns; the
                # corresponding weight rows carry the real values and the
                # pad rows are zero, so no x padding is required.
                lhs = x_ref[...].astype(jnp.bfloat16)   # (N, in_features)
                w = w_ref[0][:in_features, :]           # (in_features, FPAD)
            else:
                lhs = x[:, :kdim].astype(jnp.bfloat16)  # (N, kdim)
                w = w_ref[l]                            # (kdim, FPAD) bf16

            # Linear (bf16 MXU, f32 accumulate) + bias, then graph prop.
            h = jnp.dot(lhs, w, preferred_element_type=jnp.float32) + b
            h = jnp.dot(adj, h, preferred_element_type=jnp.float32)

            # BatchNorm1d over the node (batch) dim, biased variance.
            # E[x^2] - mean^2 form: the two axis-0 reductions are independent;
            # gamma folded into the (1, FPAD) scale row; rsqrt -> EUP.
            s1 = jnp.sum(h, axis=0, keepdims=True)
            s2 = jnp.sum(h * h, axis=0, keepdims=True)
            mean = s1 * inv_n
            var = jnp.maximum(s2 * inv_n - mean * mean, 0.0)
            scale = gamma * jax.lax.rsqrt(var + BN_EPS)
            h = (h - mean) * scale + beta

            # ReLU + residual add (no residual into the first layer output).
            h = jnp.maximum(h, 0.0)
            if residual is not None:
                h = h + residual
            residual = h
            x = h   # dropout(p=0.2): identity (see TODO at top of file)

        out_ref[...] = x[:, :out_features]

    return fused_gnn_kernel


# ----------------------------------------------------------------------------
# Driver: single jitted call around one pallas_call.
# ----------------------------------------------------------------------------
@partial(jax.jit, static_argnames=("out_features",))
def full_model_forward(node_features, adj, w_stack, bgb_stack, out_features):
    n, fin = node_features.shape
    num_layers, kdim, fpad = w_stack.shape
    kernel = _make_kernel(fin, kdim, out_features, num_layers)

    vmem = pl.BlockSpec(memory_space=pltpu.MemorySpace.VMEM)

    def _nbytes(a):
        return a.size * a.dtype.itemsize

    cost = pl.CostEstimate(
        flops=2 * num_layers * (n * kdim * fpad + n * n * fpad),
        transcendentals=num_layers * fpad,          # rsqrt per column, per layer
        bytes_accessed=(_nbytes(node_features) + _nbytes(adj)
                        + _nbytes(w_stack) + _nbytes(bgb_stack)
                        + n * out_features * 4),
    )

    return pl.pallas_call(
        kernel,
        out_shape=jax.ShapeDtypeStruct((n, out_features), jnp.float32),
        in_specs=[vmem, vmem, vmem, vmem],
        out_specs=vmem,
        cost_estimate=cost,
        compiler_params=pltpu.CompilerParams(
            vmem_limit_bytes=32 * 1024 * 1024),
    )(node_features, adj, w_stack, bgb_stack)


# ----------------------------------------------------------------------------
# Deterministic parameter / input construction (plain JAX glue).
# ----------------------------------------------------------------------------
def build_params(key, in_features, hidden_size, embedding_size,
                 num_layers=NUM_LAYERS):
    dims = [in_features] + [hidden_size] * (num_layers - 1) + [embedding_size]
    kdim = _round_up(max(dims[:-1]), 8)        # contraction width (sublanes)
    fpad = _round_up(max(max(dims[1:]), 128), 128)  # lane-dense output width

    w_stack = jnp.zeros((num_layers, kdim, fpad), jnp.float32)
    bgb_stack = jnp.zeros((num_layers, 8, fpad), jnp.float32)
    keys = jax.random.split(key, num_layers)
    for li in range(num_layers):
        fin, fout = dims[li], dims[li + 1]
        kw, kb = jax.random.split(keys[li])
        bound = 1.0 / math.sqrt(fin)           # nn.Linear default init
        w = jax.random.uniform(kw, (fin, fout), jnp.float32, -bound, bound)
        b = jax.random.uniform(kb, (fout,), jnp.float32, -bound, bound)
        w_stack = w_stack.at[li, :fin, :fout].set(w)
        bgb_stack = bgb_stack.at[li, 0, :fout].set(b)     # bias
        bgb_stack = bgb_stack.at[li, 1, :fout].set(1.0)   # BN gamma
        # BN beta (row 2) stays zero; rows 3..7 are sublane padding.
    # NOTE: zero padding is load-bearing (pad columns of the activations must
    # stay exactly zero through x @ W and BN); bf16 cast preserves exact zeros.
    return w_stack.astype(jnp.bfloat16), bgb_stack


def normalize_adj(adj):
    rowsum = jnp.sum(adj, axis=1)
    d_inv_sqrt = jnp.power(rowsum, -0.5)
    d_inv_sqrt = jnp.where(jnp.isinf(d_inv_sqrt), 0.0, d_inv_sqrt)
    d = jnp.diag(d_inv_sqrt)
    return d @ adj @ d


def create_node_features(w, c, f, q, p):
    feats = [
        q, p, f,
        c.sum(1), c.sum(0),
        (w * c).sum(1), (w * c).sum(0),
        w.sum(1), w.sum(0),
        1.0 / (c.sum(1) + 1e-8),      # closeness
        jnp.zeros_like(q),            # betweenness
    ]
    return jnp.stack(feats, axis=1)


if __name__ == "__main__":
    # Small shapes: N=8 nodes, in_features=11 (from create_node_features),
    # hidden_size == embedding_size == 32 (residual add requires equality).
    N = 8
    IN_FEATURES = 11
    HIDDEN = 32
    EMBED = 32

    key = jax.random.PRNGKey(0)
    k_w, k_c, k_f, k_q, k_p, k_adj, k_params = jax.random.split(key, 7)

    w_mat = jax.random.uniform(k_w, (N, N), jnp.float32)
    c_mat = jax.random.uniform(k_c, (N, N), jnp.float32)
    f_vec = jax.random.uniform(k_f, (N,), jnp.float32)
    q_vec = jax.random.uniform(k_q, (N,), jnp.float32)
    p_vec = jax.random.uniform(k_p, (N,), jnp.float32)

    node_features = create_node_features(w_mat, c_mat, f_vec, q_vec, p_vec)

    adj_2 = (jax.random.uniform(k_adj, (N, N)) > 0.5).astype(jnp.float32)
    adj_2 = adj_2 + jnp.eye(N, dtype=jnp.float32)
    adj = normalize_adj(adj_2)

    w_stack, bgb_stack = build_params(k_params, IN_FEATURES, HIDDEN, EMBED)

    # Pad-zeroness invariants (keep these when changing dtypes/padding).
    assert float(jnp.max(jnp.abs(w_stack[0, IN_FEATURES:, :]))) == 0.0
    assert float(jnp.max(jnp.abs(w_stack[:, :, HIDDEN:]))) == 0.0
    assert float(jnp.max(jnp.abs(bgb_stack[:, :, HIDDEN:]))) == 0.0

    out = full_model_forward(node_features, adj, w_stack, bgb_stack,
                             out_features=EMBED)
    out = jax.block_until_ready(out)

    assert out.shape == (N, EMBED)
    assert bool(jnp.all(jnp.isfinite(out)))
    print("KERNEL_OK")
</pallas_src>

<mosaic_0001>
module attributes {stable_mosaic.version = 11 : i64} {
  func.func @fused_gnn_kernel(%arg0: memref<8x11xf32, #tpu.memory_space<vmem>>, %arg1: memref<8x8xf32, #tpu.memory_space<vmem>>, %arg2: memref<6x32x128xbf16, #tpu.memory_space<vmem>>, %arg3: memref<6x8x128xf32, #tpu.memory_space<vmem>>, %arg4: memref<8x32xf32, #tpu.memory_space<vmem>>) attributes {dimension_semantics = [], scalar_prefetch = 0 : i64, scratch_operands = 0 : i64, tpu.core_type = #tpu.core_type<tc>} {
    %c0 = arith.constant 0 : index
    %c0_0 = arith.constant 0 : index
    %0 = vector.load %arg1[%c0, %c0_0] : memref<8x8xf32, #tpu.memory_space<vmem>>, vector<8x8xf32>
    %c0_1 = arith.constant 0 : index
    %c0_2 = arith.constant 0 : index
    %c0_3 = arith.constant 0 : index
    %1 = vector.load %arg3[%c0_1, %c0_2, %c0_3] : memref<6x8x128xf32, #tpu.memory_space<vmem>>, vector<1x8x128xf32>
    %2 = vector.shape_cast %1 : vector<1x8x128xf32> to vector<8x128xf32>
    %3 = vector.extract_strided_slice %2 {offsets = [0, 0], sizes = [1, 128], strides = [1, 1]} : vector<8x128xf32> to vector<1x128xf32>
    %4 = vector.extract_strided_slice %2 {offsets = [1, 0], sizes = [1, 128], strides = [1, 1]} : vector<8x128xf32> to vector<1x128xf32>
    %5 = vector.extract_strided_slice %2 {offsets = [2, 0], sizes = [1, 128], strides = [1, 1]} : vector<8x128xf32> to vector<1x128xf32>
    %c0_4 = arith.constant 0 : index
    %c0_5 = arith.constant 0 : index
    %6 = vector.load %arg0[%c0_4, %c0_5] : memref<8x11xf32, #tpu.memory_space<vmem>>, vector<8x11xf32>
    %7 = arith.truncf %6 : vector<8x11xf32> to vector<8x11xbf16>
    %c0_6 = arith.constant 0 : index
    %c0_7 = arith.constant 0 : index
    %c0_8 = arith.constant 0 : index
    %8 = vector.load %arg2[%c0_6, %c0_7, %c0_8] : memref<6x32x128xbf16, #tpu.memory_space<vmem>>, vector<1x32x128xbf16>
    %9 = vector.shape_cast %8 : vector<1x32x128xbf16> to vector<32x128xbf16>
    %10 = vector.extract_strided_slice %9 {offsets = [0, 0], sizes = [11, 128], strides = [1, 1]} : vector<32x128xbf16> to vector<11x128xbf16>
    %cst = arith.constant dense<0.000000e+00> : vector<8x128xf32>
    %11 = tpu.matmul %7, %10, %cst {dimension_numbers = #tpu.dot_dimension_numbers<[1], [0], [0], [1], [0, 0, 1, 1], [], []>} : vector<8x11xbf16>, vector<11x128xbf16>, vector<8x128xf32> -> vector<8x128xf32>
    %12 = vector.broadcast %3 : vector<1x128xf32> to vector<8x128xf32>
    %13 = arith.addf %11, %12 : vector<8x128xf32>
    %cst_9 = arith.constant dense<0.000000e+00> : vector<8x128xf32>
    %14 = tpu.matmul %0, %13, %cst_9 {dimension_numbers = #tpu.dot_dimension_numbers<[1], [0], [0], [1], [0, 0, 1, 1], [], []>} : vector<8x8xf32>, vector<8x128xf32>, vector<8x128xf32> -> vector<8x128xf32>
    %cst_10 = arith.constant dense<0.000000e+00> : vector<128xf32>
    %15 = vector.multi_reduction <add>, %14, %cst_10 [0] : vector<8x128xf32> to vector<128xf32>
    %16 = vector.shape_cast %15 : vector<128xf32> to vector<1x128xf32>
    %17 = arith.mulf %14, %14 : vector<8x128xf32>
    %cst_11 = arith.constant dense<0.000000e+00> : vector<128xf32>
    %18 = vector.multi_reduction <add>, %17, %cst_11 [0] : vector<8x128xf32> to vector<128xf32>
    %19 = vector.shape_cast %18 : vector<128xf32> to vector<1x128xf32>
    %cst_12 = arith.constant 1.250000e-01 : f32
    %20 = vector.broadcast %cst_12 : f32 to vector<1x128xf32>
    %21 = arith.mulf %16, %20 : vector<1x128xf32>
    %cst_13 = arith.constant 1.250000e-01 : f32
    %22 = vector.broadcast %cst_13 : f32 to vector<1x128xf32>
    %23 = arith.mulf %19, %22 : vector<1x128xf32>
    %24 = arith.mulf %21, %21 : vector<1x128xf32>
    %25 = arith.subf %23, %24 : vector<1x128xf32>
    %cst_14 = arith.constant 0.000000e+00 : f32
    %26 = vector.broadcast %cst_14 : f32 to vector<1x128xf32>
    %27 = arith.maximumf %25, %26 : vector<1x128xf32>
    %cst_15 = arith.constant 9.99999974E-6 : f32
    %28 = vector.broadcast %cst_15 : f32 to vector<1x128xf32>
    %29 = arith.addf %27, %28 : vector<1x128xf32>
    %30 = math.rsqrt %29 : vector<1x128xf32>
    %31 = arith.mulf %4, %30 : vector<1x128xf32>
    %32 = vector.broadcast %21 : vector<1x128xf32> to vector<8x128xf32>
    %33 = arith.subf %14, %32 : vector<8x128xf32>
    %34 = vector.broadcast %31 : vector<1x128xf32> to vector<8x128xf32>
    %35 = arith.mulf %33, %34 : vector<8x128xf32>
    %36 = vector.broadcast %5 : vector<1x128xf32> to vector<8x128xf32>
    %37 = arith.addf %35, %36 : vector<8x128xf32>
    %cst_16 = arith.constant 0.000000e+00 : f32
    %38 = vector.broadcast %cst_16 : f32 to vector<8x128xf32>
    %39 = arith.maximumf %37, %38 : vector<8x128xf32>
    %c1 = arith.constant 1 : index
    %c0_17 = arith.constant 0 : index
    %c0_18 = arith.constant 0 : index
    %40 = vector.load %arg3[%c1, %c0_17, %c0_18] : memref<6x8x128xf32, #tpu.memory_space<vmem>>, vector<1x8x128xf32>
    %41 = vector.shape_cast %40 : vector<1x8x128xf32> to vector<8x128xf32>
    %42 = vector.extract_strided_slice %41 {offsets = [0, 0], sizes = [1, 128], strides = [1, 1]} : vector<8x128xf32> to vector<1x128xf32>
    %43 = vector.extract_strided_slice %41 {offsets = [1, 0], sizes = [1, 128], strides = [1, 1]} : vector<8x128xf32> to vector<1x128xf32>
    %44 = vector.extract_strided_slice %41 {offsets = [2, 0], sizes = [1, 128], strides = [1, 1]} : vector<8x128xf32> to vector<1x128xf32>
    %45 = vector.extract_strided_slice %39 {offsets = [0, 0], sizes = [8, 32], strides = [1, 1]} : vector<8x128xf32> to vector<8x32xf32>
    %46 = arith.truncf %45 : vector<8x32xf32> to vector<8x32xbf16>
    %c1_19 = arith.constant 1 : index
    %c0_20 = arith.constant 0 : index
    %c0_21 = arith.constant 0 : index
    %47 = vector.load %arg2[%c1_19, %c0_20, %c0_21] : memref<6x32x128xbf16, #tpu.memory_space<vmem>>, vector<1x32x128xbf16>
    %48 = vector.shape_cast %47 : vector<1x32x128xbf16> to vector<32x128xbf16>
    %cst_22 = arith.constant dense<0.000000e+00> : vector<8x128xf32>
    %49 = tpu.matmul %46, %48, %cst_22 {dimension_numbers = #tpu.dot_dimension_numbers<[1], [0], [0], [1], [0, 0, 1, 1], [], []>} : vector<8x32xbf16>, vector<32x128xbf16>, vector<8x128xf32> -> vector<8x128xf32>
    %50 = vector.broadcast %42 : vector<1x128xf32> to vector<8x128xf32>
    %51 = arith.addf %49, %50 : vector<8x128xf32>
    %cst_23 = arith.constant dense<0.000000e+00> : vector<8x128xf32>
    %52 = tpu.matmul %0, %51, %cst_23 {dimension_numbers = #tpu.dot_dimension_numbers<[1], [0], [0], [1], [0, 0, 1, 1], [], []>} : vector<8x8xf32>, vector<8x128xf32>, vector<8x128xf32> -> vector<8x128xf32>
    %cst_24 = arith.constant dense<0.000000e+00> : vector<128xf32>
    %53 = vector.multi_reduction <add>, %52, %cst_24 [0] : vector<8x128xf32> to vector<128xf32>
    %54 = vector.shape_cast %53 : vector<128xf32> to vector<1x128xf32>
    %55 = arith.mulf %52, %52 : vector<8x128xf32>
    %cst_25 = arith.constant dense<0.000000e+00> : vector<128xf32>
    %56 = vector.multi_reduction <add>, %55, %cst_25 [0] : vector<8x128xf32> to vector<128xf32>
    %57 = vector.shape_cast %56 : vector<128xf32> to vector<1x128xf32>
    %cst_26 = arith.constant 1.250000e-01 : f32
    %58 = vector.broadcast %cst_26 : f32 to vector<1x128xf32>
    %59 = arith.mulf %54, %58 : vector<1x128xf32>
    %cst_27 = arith.constant 1.250000e-01 : f32
    %60 = vector.broadcast %cst_27 : f32 to vector<1x128xf32>
    %61 = arith.mulf %57, %60 : vector<1x128xf32>
    %62 = arith.mulf %59, %59 : vector<1x128xf32>
    %63 = arith.subf %61, %62 : vector<1x128xf32>
    %cst_28 = arith.constant 0.000000e+00 : f32
    %64 = vector.broadcast %cst_28 : f32 to vector<1x128xf32>
    %65 = arith.maximumf %63, %64 : vector<1x128xf32>
    %cst_29 = arith.constant 9.99999974E-6 : f32
    %66 = vector.broadcast %cst_29 : f32 to vector<1x128xf32>
    %67 = arith.addf %65, %66 : vector<1x128xf32>
    %68 = math.rsqrt %67 : vector<1x128xf32>
    %69 = arith.mulf %43, %68 : vector<1x128xf32>
    %70 = vector.broadcast %59 : vector<1x128xf32> to vector<8x128xf32>
    %71 = arith.subf %52, %70 : vector<8x128xf32>
    %72 = vector.broadcast %69 : vector<1x128xf32> to vector<8x128xf32>
    %73 = arith.mulf %71, %72 : vector<8x128xf32>
    %74 = vector.broadcast %44 : vector<1x128xf32> to vector<8x128xf32>
    %75 = arith.addf %73, %74 : vector<8x128xf32>
    %cst_30 = arith.constant 0.000000e+00 : f32
    %76 = vector.broadcast %cst_30 : f32 to vector<8x128xf32>
    %77 = arith.maximumf %75, %76 : vector<8x128xf32>
    %78 = arith.addf %77, %39 : vector<8x128xf32>
    %c2 = arith.constant 2 : index
    %c0_31 = arith.constant 0 : index
    %c0_32 = arith.constant 0 : index
    %79 = vector.load %arg3[%c2, %c0_31, %c0_32] : memref<6x8x128xf32, #tpu.memory_space<vmem>>, vector<1x8x128xf32>
    %80 = vector.shape_cast %79 : vector<1x8x128xf32> to vector<8x128xf32>
    %81 = vector.extract_strided_slice %80 {offsets = [0, 0], sizes = [1, 128], strides = [1, 1]} : vector<8x128xf32> to vector<1x128xf32>
    %82 = vector.extract_strided_slice %80 {offsets = [1, 0], sizes = [1, 128], strides = [1, 1]} : vector<8x128xf32> to vector<1x128xf32>
    %83 = vector.extract_strided_slice %80 {offsets = [2, 0], sizes = [1, 128], strides = [1, 1]} : vector<8x128xf32> to vector<1x128xf32>
    %84 = vector.extract_strided_slice %78 {offsets = [0, 0], sizes = [8, 32], strides = [1, 1]} : vector<8x128xf32> to vector<8x32xf32>
    %85 = arith.truncf %84 : vector<8x32xf32> to vector<8x32xbf16>
    %c2_33 = arith.constant 2 : index
    %c0_34 = arith.constant 0 : index
    %c0_35 = arith.constant 0 : index
    %86 = vector.load %arg2[%c2_33, %c0_34, %c0_35] : memref<6x32x128xbf16, #tpu.memory_space<vmem>>, vector<1x32x128xbf16>
    %87 = vector.shape_cast %86 : vector<1x32x128xbf16> to vector<32x128xbf16>
    %cst_36 = arith.constant dense<0.000000e+00> : vector<8x128xf32>
    %88 = tpu.matmul %85, %87, %cst_36 {dimension_numbers = #tpu.dot_dimension_numbers<[1], [0], [0], [1], [0, 0, 1, 1], [], []>} : vector<8x32xbf16>, vector<32x128xbf16>, vector<8x128xf32> -> vector<8x128xf32>
    %89 = vector.broadcast %81 : vector<1x128xf32> to vector<8x128xf32>
    %90 = arith.addf %88, %89 : vector<8x128xf32>
    %cst_37 = arith.constant dense<0.000000e+00> : vector<8x128xf32>
    %91 = tpu.matmul %0, %90, %cst_37 {dimension_numbers = #tpu.dot_dimension_numbers<[1], [0], [0], [1], [0, 0, 1, 1], [], []>} : vector<8x8xf32>, vector<8x128xf32>, vector<8x128xf32> -> vector<8x128xf32>
    %cst_38 = arith.constant dense<0.000000e+00> : vector<128xf32>
    %92 = vector.multi_reduction <add>, %91, %cst_38 [0] : vector<8x128xf32> to vector<128xf32>
    %93 = vector.shape_cast %92 : vector<128xf32> to vector<1x128xf32>
    %94 = arith.mulf %91, %91 : vector<8x128xf32>
    %cst_39 = arith.constant dense<0.000000e+00> : vector<128xf32>
    %95 = vector.multi_reduction <add>, %94, %cst_39 [0] : vector<8x128xf32> to vector<128xf32>
    %96 = vector.shape_cast %95 : vector<128xf32> to vector<1x128xf32>
    %cst_40 = arith.constant 1.250000e-01 : f32
    %97 = vector.broadcast %cst_40 : f32 to vector<1x128xf32>
    %98 = arith.mulf %93, %97 : vector<1x128xf32>
    %cst_41 = arith.constant 1.250000e-01 : f32
    %99 = vector.broadcast %cst_41 : f32 to vector<1x128xf32>
    %100 = arith.mulf %96, %99 : vector<1x128xf32>
    %101 = arith.mulf %98, %98 : vector<1x128xf32>
    %102 = arith.subf %100, %101 : vector<1x128xf32>
    %cst_42 = arith.constant 0.000000e+00 : f32
    %103 = vector.broadcast %cst_42 : f32 to vector<1x128xf32>
    %104 = arith.maximumf %102, %103 : vector<1x128xf32>
    %cst_43 = arith.constant 9.99999974E-6 : f32
    %105 = vector.broadcast %cst_43 : f32 to vector<1x128xf32>
    %106 = arith.addf %104, %105 : vector<1x128xf32>
    %107 = math.rsqrt %106 : vector<1x128xf32>
    %108 = arith.mulf %82, %107 : vector<1x128xf32>
    %109 = vector.broadcast %98 : vector<1x128xf32> to vector<8x128xf32>
    %110 = arith.subf %91, %109 : vector<8x128xf32>
    %111 = vector.broadcast %108 : vector<1x128xf32> to vector<8x128xf32>
    %112 = arith.mulf %110, %111 : vector<8x128xf32>
    %113 = vector.broadcast %83 : vector<1x128xf32> to vector<8x128xf32>
    %114 = arith.addf %112, %113 : vector<8x128xf32>
    %cst_44 = arith.constant 0.000000e+00 : f32
    %115 = vector.broadcast %cst_44 : f32 to vector<8x128xf32>
    %116 = arith.maximumf %114, %115 : vector<8x128xf32>
    %117 = arith.addf %116, %78 : vector<8x128xf32>
    %c3 = arith.constant 3 : index
    %c0_45 = arith.constant 0 : index
    %c0_46 = arith.constant 0 : index
    %118 = vector.load %arg3[%c3, %c0_45, %c0_46] : memref<6x8x128xf32, #tpu.memory_space<vmem>>, vector<1x8x128xf32>
    %119 = vector.shape_cast %118 : vector<1x8x128xf32> to vector<8x128xf32>
    %120 = vector.extract_strided_slice %119 {offsets = [0, 0], sizes = [1, 128], strides = [1, 1]} : vector<8x128xf32> to vector<1x128xf32>
    %121 = vector.extract_strided_slice %119 {offsets = [1, 0], sizes = [1, 128], strides = [1, 1]} : vector<8x128xf32> to vector<1x128xf32>
    %122 = vector.extract_strided_slice %119 {offsets = [2, 0], sizes = [1, 128], strides = [1, 1]} : vector<8x128xf32> to vector<1x128xf32>
    %123 = vector.extract_strided_slice %117 {offsets = [0, 0], sizes = [8, 32], strides = [1, 1]} : vector<8x128xf32> to vector<8x32xf32>
    %124 = arith.truncf %123 : vector<8x32xf32> to vector<8x32xbf16>
    %c3_47 = arith.constant 3 : index
    %c0_48 = arith.constant 0 : index
    %c0_49 = arith.constant 0 : index
    %125 = vector.load %arg2[%c3_47, %c0_48, %c0_49] : memref<6x32x128xbf16, #tpu.memory_space<vmem>>, vector<1x32x128xbf16>
    %126 = vector.shape_cast %125 : vector<1x32x128xbf16> to vector<32x128xbf16>
    %cst_50 = arith.constant dense<0.000000e+00> : vector<8x128xf32>
    %127 = tpu.matmul %124, %126, %cst_50 {dimension_numbers = #tpu.dot_dimension_numbers<[1], [0], [0], [1], [0, 0, 1, 1], [], []>} : vector<8x32xbf16>, vector<32x128xbf16>, vector<8x128xf32> -> vector<8x128xf32>
    %128 = vector.broadcast %120 : vector<1x128xf32> to vector<8x128xf32>
    %129 = arith.addf %127, %128 : vector<8x128xf32>
    %cst_51 = arith.constant dense<0.000000e+00> : vector<8x128xf32>
    %130 = tpu.matmul %0, %129, %cst_51 {dimension_numbers = #tpu.dot_dimension_numbers<[1], [0], [0], [1], [0, 0, 1, 1], [], []>} : vector<8x8xf32>, vector<8x128xf32>, vector<8x128xf32> -> vector<8x128xf32>
    %cst_52 = arith.constant dense<0.000000e+00> : vector<128xf32>
    %131 = vector.multi_reduction <add>, %130, %cst_52 [0] : vector<8x128xf32> to vector<128xf32>
    %132 = vector.shape_cast %131 : vector<128xf32> to vector<1x128xf32>
    %133 = arith.mulf %130, %130 : vector<8x128xf32>
    %cst_53 = arith.constant dense<0.000000e+00> : vector<128xf32>
    %134 = vector.multi_reduction <add>, %133, %cst_53 [0] : vector<8x128xf32> to vector<128xf32>
    %135 = vector.shape_cast %134 : vector<128xf32> to vector<1x128xf32>
    %cst_54 = arith.constant 1.250000e-01 : f32
    %136 = vector.broadcast %cst_54 : f32 to vector<1x128xf32>
    %137 = arith.mulf %132, %136 : vector<1x128xf32>
    %cst_55 = arith.constant 1.250000e-01 : f32
    %138 = vector.broadcast %cst_55 : f32 to vector<1x128xf32>
    %139 = arith.mulf %135, %138 : vector<1x128xf32>
    %140 = arith.mulf %137, %137 : vector<1x128xf32>
    %141 = arith.subf %139, %140 : vector<1x128xf32>
    %cst_56 = arith.constant 0.000000e+00 : f32
    %142 = vector.broadcast %cst_56 : f32 to vector<1x128xf32>
    %143 = arith.maximumf %141, %142 : vector<1x128xf32>
    %cst_57 = arith.constant 9.99999974E-6 : f32
    %144 = vector.broadcast %cst_57 : f32 to vector<1x128xf32>
    %145 = arith.addf %143, %144 : vector<1x128xf32>
    %146 = math.rsqrt %145 : vector<1x128xf32>
    %147 = arith.mulf %121, %146 : vector<1x128xf32>
    %148 = vector.broadcast %137 : vector<1x128xf32> to vector<8x128xf32>
    %149 = arith.subf %130, %148 : vector<8x128xf32>
    %150 = vector.broadcast %147 : vector<1x128xf32> to vector<8x128xf32>
    %151 = arith.mulf %149, %150 : vector<8x128xf32>
    %152 = vector.broadcast %122 : vector<1x128xf32> to vector<8x128xf32>
    %153 = arith.addf %151, %152 : vector<8x128xf32>
    %cst_58 = arith.constant 0.000000e+00 : f32
    %154 = vector.broadcast %cst_58 : f32 to vector<8x128xf32>
    %155 = arith.maximumf %153, %154 : vector<8x128xf32>
    %156 = arith.addf %155, %117 : vector<8x128xf32>
    %c4 = arith.constant 4 : index
    %c0_59 = arith.constant 0 : index
    %c0_60 = arith.constant 0 : index
    %157 = vector.load %arg3[%c4, %c0_59, %c0_60] : memref<6x8x128xf32, #tpu.memory_space<vmem>>, vector<1x8x128xf32>
    %158 = vector.shape_cast %157 : vector<1x8x128xf32> to vector<8x128xf32>
    %159 = vector.extract_strided_slice %158 {offsets = [0, 0], sizes = [1, 128], strides = [1, 1]} : vector<8x128xf32> to vector<1x128xf32>
    %160 = vector.extract_strided_slice %158 {offsets = [1, 0], sizes = [1, 128], strides = [1, 1]} : vector<8x128xf32> to vector<1x128xf32>
    %161 = vector.extract_strided_slice %158 {offsets = [2, 0], sizes = [1, 128], strides = [1, 1]} : vector<8x128xf32> to vector<1x128xf32>
    %162 = vector.extract_strided_slice %156 {offsets = [0, 0], sizes = [8, 32], strides = [1, 1]} : vector<8x128xf32> to vector<8x32xf32>
    %163 = arith.truncf %162 : vector<8x32xf32> to vector<8x32xbf16>
    %c4_61 = arith.constant 4 : index
    %c0_62 = arith.constant 0 : index
    %c0_63 = arith.constant 0 : index
    %164 = vector.load %arg2[%c4_61, %c0_62, %c0_63] : memref<6x32x128xbf16, #tpu.memory_space<vmem>>, vector<1x32x128xbf16>
    %165 = vector.shape_cast %164 : vector<1x32x128xbf16> to vector<32x128xbf16>
    %cst_64 = arith.constant dense<0.000000e+00> : vector<8x128xf32>
    %166 = tpu.matmul %163, %165, %cst_64 {dimension_numbers = #tpu.dot_dimension_numbers<[1], [0], [0], [1], [0, 0, 1, 1], [], []>} : vector<8x32xbf16>, vector<32x128xbf16>, vector<8x128xf32> -> vector<8x128xf32>
    %167 = vector.broadcast %159 : vector<1x128xf32> to vector<8x128xf32>
    %168 = arith.addf %166, %167 : vector<8x128xf32>
    %cst_65 = arith.constant dense<0.000000e+00> : vector<8x128xf32>
    %169 = tpu.matmul %0, %168, %cst_65 {dimension_numbers = #tpu.dot_dimension_numbers<[1], [0], [0], [1], [0, 0, 1, 1], [], []>} : vector<8x8xf32>, vector<8x128xf32>, vector<8x128xf32> -> vector<8x128xf32>
    %cst_66 = arith.constant dense<0.000000e+00> : vector<128xf32>
    %170 = vector.multi_reduction <add>, %169, %cst_66 [0] : vector<8x128xf32> to vector<128xf32>
    %171 = vector.shape_cast %170 : vector<128xf32> to vector<1x128xf32>
    %172 = arith.mulf %169, %169 : vector<8x128xf32>
    %cst_67 = arith.constant dense<0.000000e+00> : vector<128xf32>
    %173 = vector.multi_reduction <add>, %172, %cst_67 [0] : vector<8x128xf32> to vector<128xf32>
    %174 = vector.shape_cast %173 : vector<128xf32> to vector<1x128xf32>
    %cst_68 = arith.constant 1.250000e-01 : f32
    %175 = vector.broadcast %cst_68 : f32 to vector<1x128xf32>
    %176 = arith.mulf %171, %175 : vector<1x128xf32>
    %cst_69 = arith.constant 1.250000e-01 : f32
    %177 = vector.broadcast %cst_69 : f32 to vector<1x128xf32>
    %178 = arith.mulf %174, %177 : vector<1x128xf32>
    %179 = arith.mulf %176, %176 : vector<1x128xf32>
    %180 = arith.subf %178, %179 : vector<1x128xf32>
    %cst_70 = arith.constant 0.000000e+00 : f32
    %181 = vector.broadcast %cst_70 : f32 to vector<1x128xf32>
    %182 = arith.maximumf %180, %181 : vector<1x128xf32>
    %cst_71 = arith.constant 9.99999974E-6 : f32
    %183 = vector.broadcast %cst_71 : f32 to vector<1x128xf32>
    %184 = arith.addf %182, %183 : vector<1x128xf32>
    %185 = math.rsqrt %184 : vector<1x128xf32>
    %186 = arith.mulf %160, %185 : vector<1x128xf32>
    %187 = vector.broadcast %176 : vector<1x128xf32> to vector<8x128xf32>
    %188 = arith.subf %169, %187 : vector<8x128xf32>
    %189 = vector.broadcast %186 : vector<1x128xf32> to vector<8x128xf32>
    %190 = arith.mulf %188, %189 : vector<8x128xf32>
    %191 = vector.broadcast %161 : vector<1x128xf32> to vector<8x128xf32>
    %192 = arith.addf %190, %191 : vector<8x128xf32>
    %cst_72 = arith.constant 0.000000e+00 : f32
    %193 = vector.broadcast %cst_72 : f32 to vector<8x128xf32>
    %194 = arith.maximumf %192, %193 : vector<8x128xf32>
    %195 = arith.addf %194, %156 : vector<8x128xf32>
    %c5 = arith.constant 5 : index
    %c0_73 = arith.constant 0 : index
    %c0_74 = arith.constant 0 : index
    %196 = vector.load %arg3[%c5, %c0_73, %c0_74] : memref<6x8x128xf32, #tpu.memory_space<vmem>>, vector<1x8x128xf32>
    %197 = vector.shape_cast %196 : vector<1x8x128xf32> to vector<8x128xf32>
    %198 = vector.extract_strided_slice %197 {offsets = [0, 0], sizes = [1, 128], strides = [1, 1]} : vector<8x128xf32> to vector<1x128xf32>
    %199 = vector.extract_strided_slice %197 {offsets = [1, 0], sizes = [1, 128], strides = [1, 1]} : vector<8x128xf32> to vector<1x128xf32>
    %200 = vector.extract_strided_slice %197 {offsets = [2, 0], sizes = [1, 128], strides = [1, 1]} : vector<8x128xf32> to vector<1x128xf32>
    %201 = vector.extract_strided_slice %195 {offsets = [0, 0], sizes = [8, 32], strides = [1, 1]} : vector<8x128xf32> to vector<8x32xf32>
    %202 = arith.truncf %201 : vector<8x32xf32> to vector<8x32xbf16>
    %c5_75 = arith.constant 5 : index
    %c0_76 = arith.constant 0 : index
    %c0_77 = arith.constant 0 : index
    %203 = vector.load %arg2[%c5_75, %c0_76, %c0_77] : memref<6x32x128xbf16, #tpu.memory_space<vmem>>, vector<1x32x128xbf16>
    %204 = vector.shape_cast %203 : vector<1x32x128xbf16> to vector<32x128xbf16>
    %cst_78 = arith.constant dense<0.000000e+00> : vector<8x128xf32>
    %205 = tpu.matmul %202, %204, %cst_78 {dimension_numbers = #tpu.dot_dimension_numbers<[1], [0], [0], [1], [0, 0, 1, 1], [], []>} : vector<8x32xbf16>, vector<32x128xbf16>, vector<8x128xf32> -> vector<8x128xf32>
    %206 = vector.broadcast %198 : vector<1x128xf32> to vector<8x128xf32>
    %207 = arith.addf %205, %206 : vector<8x128xf32>
    %cst_79 = arith.constant dense<0.000000e+00> : vector<8x128xf32>
    %208 = tpu.matmul %0, %207, %cst_79 {dimension_numbers = #tpu.dot_dimension_numbers<[1], [0], [0], [1], [0, 0, 1, 1], [], []>} : vector<8x8xf32>, vector<8x128xf32>, vector<8x128xf32> -> vector<8x128xf32>
    %cst_80 = arith.constant dense<0.000000e+00> : vector<128xf32>
    %209 = vector.multi_reduction <add>, %208, %cst_80 [0] : vector<8x128xf32> to vector<128xf32>
    %210 = vector.shape_cast %209 : vector<128xf32> to vector<1x128xf32>
    %211 = arith.mulf %208, %208 : vector<8x128xf32>
    %cst_81 = arith.constant dense<0.000000e+00> : vector<128xf32>
    %212 = vector.multi_reduction <add>, %211, %cst_81 [0] : vector<8x128xf32> to vector<128xf32>
    %213 = vector.shape_cast %212 : vector<128xf32> to vector<1x128xf32>
    %cst_82 = arith.constant 1.250000e-01 : f32
    %214 = vector.broadcast %cst_82 : f32 to vector<1x128xf32>
    %215 = arith.mulf %210, %214 : vector<1x128xf32>
    %cst_83 = arith.constant 1.250000e-01 : f32
    %216 = vector.broadcast %cst_83 : f32 to vector<1x128xf32>
    %217 = arith.mulf %213, %216 : vector<1x128xf32>
    %218 = arith.mulf %215, %215 : vector<1x128xf32>
    %219 = arith.subf %217, %218 : vector<1x128xf32>
    %cst_84 = arith.constant 0.000000e+00 : f32
    %220 = vector.broadcast %cst_84 : f32 to vector<1x128xf32>
    %221 = arith.maximumf %219, %220 : vector<1x128xf32>
    %cst_85 = arith.constant 9.99999974E-6 : f32
    %222 = vector.broadcast %cst_85 : f32 to vector<1x128xf32>
    %223 = arith.addf %221, %222 : vector<1x128xf32>
    %224 = math.rsqrt %223 : vector<1x128xf32>
    %225 = arith.mulf %199, %224 : vector<1x128xf32>
    %226 = vector.broadcast %215 : vector<1x128xf32> to vector<8x128xf32>
    %227 = arith.subf %208, %226 : vector<8x128xf32>
    %228 = vector.broadcast %225 : vector<1x128xf32> to vector<8x128xf32>
    %229 = arith.mulf %227, %228 : vector<8x128xf32>
    %230 = vector.broadcast %200 : vector<1x128xf32> to vector<8x128xf32>
    %231 = arith.addf %229, %230 : vector<8x128xf32>
    %cst_86 = arith.constant 0.000000e+00 : f32
    %232 = vector.broadcast %cst_86 : f32 to vector<8x128xf32>
    %233 = arith.maximumf %231, %232 : vector<8x128xf32>
    %234 = arith.addf %233, %195 : vector<8x128xf32>
    %235 = vector.extract_strided_slice %234 {offsets = [0, 0], sizes = [8, 32], strides = [1, 1]} : vector<8x128xf32> to vector<8x32xf32>
    %c0_87 = arith.constant 0 : index
    %c0_88 = arith.constant 0 : index
    %236 = vector.load %arg4[%c0_87, %c0_88] : memref<8x32xf32, #tpu.memory_space<vmem>>, vector<8x32xf32>
    tpu.vector_store %arg4[%c0_87, %c0_88], %235 {strides = array<i32>} : memref<8x32xf32, #tpu.memory_space<vmem>>, vector<8x32xf32>,
    return
  }
}

</mosaic_0001>

<bundles_post_ra>
// kernel: full_model_forward.1
= control target key start
LH: loop header
LB: loop body
LE: loop exit
PB: predicated region body
PF: predicated region fallthrough
CT: control target
= control target key end

     0   :  { %9 = vsyncpa [#allocation3], 0  ;;  %s952_s0 = inlined_call_operand.hbm [shape: f32[8,11], index: 0, kind: input, shape index: {}]   ;;  %s953_s1 = inlined_call_operand.hbm [shape: f32[8,8], index: 1, kind: input, shape index: {}]   ;;  %s954_s2 = inlined_call_operand.hbm [shape: bf16[6,32,128], index: 2, kind: input, shape index: {}]   ;;  %s955_s3 = inlined_call_operand.hbm [shape: f32[6,8,128], index: 3, kind: input, shape index: {}]   ;;  %s956_s4 = inlined_call_operand.hbm [shape: f32[8,32], index: 4, kind: output, shape index: {}]  }
   0x1   :  { %10 = vsyncpa [#allocation6], 0 }
   0x2   :  { %11 = vsyncpa [#allocation9], 0  ;;  %s29_s17 = sshll.u32 %s953_s1, 4  ;;  %s30_s17 = int_to_ptr.hbm [resolvable:$true] %s29_s17 }
   0x3   :  { %12 = vsyncpa [#allocation4], 0  ;;  %s882_s18 = smov [#allocation5]   ;;  %s18_s22 = sshll.u32 %s952_s0, 4  ;;  %s19_s22 = int_to_ptr.hbm [resolvable:$true] %s18_s22 }
   0x4   :  { %s31_s19 = sshll.u32 %s882_s18, 4  ;;  %s883_s23 = smov [#allocation2]   ;;  %s32_s19 = int_to_ptr.vmem [resolvable:$true] %s31_s19 }
   0x5   :  { %34 = dma.hbm_to_vmem [thread:$0]  %s30_s17, 128, %s32_s19, [#allocation6]  }
   0x6   :  { %s20_s24 = sshll.u32 %s883_s23, 4  ;;  %s39_s27 = sshll.u32 %s954_s2, 4  ;;  %s21_s24 = int_to_ptr.vmem [resolvable:$true] %s20_s24  ;;  %s40_s27 = int_to_ptr.hbm [resolvable:$true] %s39_s27 }
   0x7   :  { %23 = dma.hbm_to_vmem [thread:$0]  %s19_s22, 128, %s21_s24, [#allocation3]  }
   0x8   :  { %s884_s1 = smov [#allocation7]   ;;  %s52_s5 = sshll.u32 %s955_s3, 4  ;;  %s53_s5 = int_to_ptr.hbm [resolvable:$true] %s52_s5 }
   0x9   :  { %s41_s28 = sshll.u32 %s884_s1, 4  ;;  %s885_s6 = smov 64   ;;  %s42_s28 = int_to_ptr.vmem [resolvable:$true] %s41_s28 }
   0xa   :  { %s886_s0 = smov 4   ;;  %s887_s7 = smov [#allocation8]  }
   0xb   :  { %47 = dma.hbm_to_vmem [thread:$0]  %s40_s27, 1536, %s42_s28, [#allocation6], %s885_s6, %s885_s6, %s886_s0  }
   0xc   :  { %s54_s8 = sshll.u32 %s887_s7, 4  ;;  %s888_s9 = smov 128   ;;  %s55_s8 = int_to_ptr.vmem [resolvable:$true] %s54_s8 }
   0xd   :  { %s889_s10 = smov 8  }
   0xe   :  { %60 = dma.hbm_to_vmem [thread:$0]  %s53_s5, 768, %s55_s8, [#allocation9], %s888_s9, %s888_s9, %s889_s10  }
   0xf   :  { %874 = dma.done.wait [#allocation3], 128  }
  0x10   :  { %875 = vsyncadd [#allocation3], 4294967168 }
  0x11   :  { %876 = dma.done.wait [#allocation6], 1664  }
  0x12   :  { %877 = vsyncadd [#allocation6], 4294965632 }
  0x13   :  { %878 = dma.done.wait [#allocation9], 768  }
  0x14   :  { %879 = vsyncadd [#allocation9], 4294966528  ;;  %vm94_vm0 = vcmask 1044480   ;;  %vm95_vm1 = vcmask 1045504   ;;  %v890_v0 = vmov 65535   ;;  %v721_v3 = vld [vmem:[#allocation7] sm:$0xff] }
  0x15   :  { %v96_v1 = vsel %vm94_vm0, 4294967295, %v890_v0  ;;  %v80_v4 = vld [vmem:[#allocation2] sm:$0xff]  ;;  %vm90_vm2 = vcmask 89088   ;;  %v79_v7 = vld [vmem:[#allocation8] sm:$0xff]  ;;  %v929_v11 = vld [vmem:[#allocation5] sm:$0xff]  ;;  %vm114_vm3 = vcmask 64512  }
  0x16   :  { %v97_v2 = vsel %vm95_vm1, %v96_v1, 0  ;;  %v81_v6 = vpack.c.bf16 %v80_v4, %v80_v4  ;;  %v84_v8 = vperm.slane %v79_v7, 0  ;;  %v723_v26 = vld [vmem:[#allocation7 + $0x18] sm:$0xff]  ;;  %v722_v29 = vld [vmem:[#allocation7 + $0x10] sm:$0xff]  ;;  %v171_v43 = vperm.slane %v79_v7, 2  ;;  %v175_v50 = vld [vmem:[#allocation8 + $0x8] sm:$0xff] }
  0x17   :  { %v99_v5 = vand.u32 %v721_v3, %v97_v2  ;;  %205 = vmatpush.bf16.msra.mxu2 %v723_v26  ;;  %vm195_vm7 = vcmask 261120   ;;  %v182_v51 = vperm.slane %v175_v50, 0  ;;  %s891_s2 = smov [#allocation10]   ;;  %s653_s13 = sshll.u32 %s956_s4, 4  ;;  %s654_s13 = int_to_ptr.hbm [resolvable:$true] %s653_s13 }
  0x18   :  { %s651_s3 = sshll.u32 %s891_s2, 4  ;;  %s652_s3 = int_to_ptr.vmem [resolvable:$true] %s651_s3 }
  0x19   :  { %108 = vmatpush.bf16.msra.mxu0 %v99_v5 }
  0x1b   :  { %206 = vmatpush.bf16.msra.mxu2 %v722_v29 }
  0x1c   :  { %669 = vmatmul.msk.bf16.vlgmr.msra.gmra.mxu0 %vm90_vm2, %v81_v6  ;;  %v725_v6 = vld [vmem:[#allocation7 + $0x28] sm:$0xff] }
  0x99   :  { %v110_v9 = vpop.f32.mrf.mxu0 }
  0x9a   :  { %v111_v10 = vadd.f32 %v110_v9, %v84_v8 }
  0x9c   :  { %133 = vmatpush.msra.mxu1 %v111_v10  ;;  %v724_v10 = vld [vmem:[#allocation7 + $0x20] sm:$0xff] }
  0x9d   :  { %670 = vmatmul.msk.f32.vlgmr.msra.gmra.mxu1 %vm114_vm3, %v929_v11 }
  0x9e   :  { %299 = vmatpush.bf16.msrb.mxu1 %v725_v6 }
  0xa1   :  { %v112_v12 = vpop.f32.mrf.mxu0 }
  0xa2   :  { %300 = vmatpush.bf16.msrb.mxu1 %v724_v10 }
 0x11a   :  { %v135_v13 = vpop.f32.mrf.mxu1 }
 0x11b   :  { %v138_v14 = vrot.slane %v135_v13, 4  ;;  %v144_v15 = vmul.f32 %v135_v13, %v135_v13 }
 0x11d   :  { %v139_v16 = vadd.f32 %v138_v14, %v135_v13  ;;  %v145_v17 = vrot.slane %v144_v15, 4 }
 0x11f   :  { %v140_v18 = vrot.slane %v139_v16, 2  ;;  %v146_v19 = vadd.f32 %v145_v17, %v144_v15 }
 0x121   :  { %v141_v20 = vadd.f32 %v140_v18, %v139_v16  ;;  %v147_v21 = vrot.slane %v146_v19, 2 }
 0x123   :  { %v142_v22 = vrot.slane %v141_v20, 1  ;;  %v148_v23 = vadd.f32 %v147_v21, %v146_v19 }
 0x125   :  { %v143_v24 = vadd.f32 %v142_v22, %v141_v20  ;;  %v149_v25 = vrot.slane %v148_v23, 1  ;;  %v265_v22 = vperm.slane %v175_v50, 2 }
 0x127   :  { %v150_v27 = vadd.f32 %v149_v25, %v148_v23  ;;  %v151_v28 = vmul.f32 0.125, %v143_v24 }
 0x129   :  { %v152_v30 = vmul.f32 0.125, %v150_v27  ;;  %v153_v31 = vmul.f32 %v151_v28, %v151_v28  ;;  %v168_v44 = vsub.f32 %v135_v13, %v151_v28 }
 0x12b   :  { %v154_v32 = vsub.f32 %v152_v30, %v153_v31  ;;  %v270_v30 = vld [vmem:[#allocation8 + $0x10] sm:$0xff] }
 0x12c   :  { %v277_v31 = vperm.slane %v270_v30, 0 }
 0x12d   :  { %v155_v33 = vmax.f32 %v154_v32, 0.0 }
 0x12f   :  { %v156_v34 = vadd.f32 1e-05, %v155_v33 }
 0x131   :  { %742 = vrsqrt.f32 %v156_v34  ;;  %vm163_vm5 = vweird.f32 %v156_v34 }
 0x137   :  { %v743_v35 = vpop.eup %742 }
 0x138   :  { %v158_v36 = vmul.f32 %v743_v35, %v156_v34  ;;  %vm164_vm4 = vweird.f32 %v743_v35 }
 0x139   :  { %vm165_vm6 = vmor %vm163_vm5, %vm164_vm4 }
 0x13a   :  { %v159_v37 = vmul.f32 %v743_v35, %v158_v36 }
 0x13c   :  { %v160_v38 = vmul.f32 0.5, %v159_v37 }
 0x13e   :  { %v161_v39 = vsub.f32 1.5, %v160_v38 }
 0x140   :  { %v162_v40 = vmul.f32 %v743_v35, %v161_v39 }
 0x142   :  { %v166_v41 = vsel %vm165_vm6, %v743_v35, %v162_v40 }
 0x143   :  { %v167_v42 = vmul.f32 %v166_v41, %v79_v7 }
 0x145   :  { %v169_v45 = vperm.slane %v167_v42, 1 }
 0x147   :  { %v170_v46 = vmul.f32 %v169_v45, %v168_v44 }
 0x149   :  { %v172_v47 = vadd.f32 %v171_v43, %v170_v46 }
 0x14b   :  { %v173_v48 = vmax.f32 %v172_v47, 0.0 }
 0x14d   :  { %v176_v49 = vpack.c.bf16 %v173_v48, %v173_v48 }
 0x14f   :  { %679 = vmatmul.msk.bf16.vlgmr.msra.gmra.mxu2 %vm195_vm7, %v176_v49 }
 0x1d2   :  { %v208_v52 = vpop.f32.mrf.mxu2 }
 0x1d3   :  { %v209_v53 = vadd.f32 %v208_v52, %v182_v51 }
 0x1d5   :  { %227 = vmatpush.msra.mxu3 %v209_v53 }
 0x1d6   :  { %680 = vmatmul.msk.f32.vlgmr.msra.gmra.mxu3 %vm114_vm3, %v929_v11 }
 0x1da   :  { %v210_v54 = vpop.f32.mrf.mxu2 }
 0x1db   :  { %v726_v54 = vld [vmem:[#allocation7 + $0x30] sm:$0xff] }
 0x259   :  { %v229_v55 = vpop.f32.mrf.mxu3 }
 0x25a   :  { %v232_v56 = vrot.slane %v229_v55, 4  ;;  %v238_v57 = vmul.f32 %v229_v55, %v229_v55 }
 0x25c   :  { %v233_v58 = vadd.f32 %v232_v56, %v229_v55  ;;  %v239_v59 = vrot.slane %v238_v57, 4 }
 0x25e   :  { %v234_v60 = vrot.slane %v233_v58, 2  ;;  %v240_v61 = vadd.f32 %v239_v59, %v238_v57 }
 0x260   :  { %v235_v62 = vadd.f32 %v234_v60, %v233_v58  ;;  %v241_v63 = vrot.slane %v240_v61, 2 }
 0x262   :  { %v236_v0 = vrot.slane %v235_v62, 1  ;;  %v242_v1 = vadd.f32 %v241_v63, %v240_v61 }
 0x264   :  { %v237_v2 = vadd.f32 %v236_v0, %v235_v62  ;;  %v243_v3 = vrot.slane %v242_v1, 1 }
 0x266   :  { %v244_v4 = vadd.f32 %v243_v3, %v242_v1  ;;  %v245_v5 = vmul.f32 0.125, %v237_v2  ;;  %v359_v1 = vperm.slane %v270_v30, 2 }
 0x268   :  { %v246_v7 = vmul.f32 0.125, %v244_v4  ;;  %v247_v8 = vmul.f32 %v245_v5, %v245_v5  ;;  %v262_v23 = vsub.f32 %v229_v55, %v245_v5 }
 0x26a   :  { %v248_v9 = vsub.f32 %v246_v7, %v247_v8 }
 0x26c   :  { %v249_v12 = vmax.f32 %v248_v9, 0.0  ;;  %v364_v9 = vld [vmem:[#allocation8 + $0x18] sm:$0xff] }
 0x26d   :  { %v371_v10 = vperm.slane %v364_v9, 0 }
 0x26e   :  { %v250_v13 = vadd.f32 1e-05, %v249_v12 }
 0x270   :  { %744 = vrsqrt.f32 %v250_v13  ;;  %vm257_vm9 = vweird.f32 %v250_v13 }
 0x276   :  { %v745_v14 = vpop.eup %744 }
 0x277   :  { %v252_v15 = vmul.f32 %v745_v14, %v250_v13  ;;  %vm258_vm8 = vweird.f32 %v745_v14 }
 0x278   :  { %vm259_vm10 = vmor %vm257_vm9, %vm258_vm8 }
 0x279   :  { %v253_v16 = vmul.f32 %v745_v14, %v252_v15 }
 0x27b   :  { %v254_v17 = vmul.f32 0.5, %v253_v16 }
 0x27d   :  { %v255_v18 = vsub.f32 1.5, %v254_v17 }
 0x27f   :  { %v256_v19 = vmul.f32 %v745_v14, %v255_v18 }
 0x281   :  { %v260_v20 = vsel %vm259_vm10, %v745_v14, %v256_v19 }
 0x282   :  { %v261_v21 = vmul.f32 %v260_v20, %v175_v50  ;;  %v727_v50 = vld [vmem:[#allocation7 + $0x38] sm:$0xff] }
 0x284   :  { %v263_v24 = vperm.slane %v261_v21, 1 }
 0x286   :  { %v264_v25 = vmul.f32 %v263_v24, %v262_v23 }
 0x288   :  { %v266_v26 = vadd.f32 %v265_v22, %v264_v25 }
 0x28a   :  { %v267_v27 = vmax.f32 %v266_v26, 0.0 }
 0x28c   :  { %v268_v28 = vadd.f32 %v267_v27, %v173_v48 }
 0x28e   :  { %v271_v29 = vpack.c.bf16 %v268_v28, %v268_v28 }
 0x290   :  { %689 = vmatmul.msk.bf16.vlgmr.msrb.gmra.mxu1 %vm195_vm7, %v271_v29 }
 0x30d   :  { %v302_v32 = vpop.f32.mrf.mxu1 }
 0x30e   :  { %v303_v33 = vadd.f32 %v302_v32, %v277_v31 }
 0x310   :  { %321 = vmatpush.msrb.mxu3 %v303_v33 }
 0x311   :  { %690 = vmatmul.msk.f32.vlgmr.msrb.gmra.mxu3 %vm114_vm3, %v929_v11 }
 0x312   :  { %393 = vmatpush.bf16.msra.mxu3 %v727_v50 }
 0x315   :  { %v304_v34 = vpop.f32.mrf.mxu1 }
 0x316   :  { %394 = vmatpush.bf16.msra.mxu3 %v726_v54  ;;  %v728_v34 = vld [vmem:[#allocation7 + $0x40] sm:$0xff] }
 0x394   :  { %v323_v35 = vpop.f32.mrf.mxu3 }
 0x395   :  { %v326_v36 = vrot.slane %v323_v35, 4  ;;  %v332_v37 = vmul.f32 %v323_v35, %v323_v35 }
 0x397   :  { %v327_v38 = vadd.f32 %v326_v36, %v323_v35  ;;  %v333_v39 = vrot.slane %v332_v37, 4 }
 0x399   :  { %v328_v40 = vrot.slane %v327_v38, 2  ;;  %v334_v41 = vadd.f32 %v333_v39, %v332_v37 }
 0x39b   :  { %v329_v42 = vadd.f32 %v328_v40, %v327_v38  ;;  %v335_v43 = vrot.slane %v334_v41, 2 }
 0x39d   :  { %v330_v44 = vrot.slane %v329_v42, 1  ;;  %v336_v45 = vadd.f32 %v335_v43, %v334_v41 }
 0x39f   :  { %v331_v46 = vadd.f32 %v330_v44, %v329_v42  ;;  %v337_v47 = vrot.slane %v336_v45, 1 }
 0x3a1   :  { %v338_v48 = vadd.f32 %v337_v47, %v336_v45  ;;  %v339_v49 = vmul.f32 0.125, %v331_v46  ;;  %v453_v45 = vperm.slane %v364_v9, 2 }
 0x3a3   :  { %v340_v51 = vmul.f32 0.125, %v338_v48  ;;  %v341_v52 = vmul.f32 %v339_v49, %v339_v49  ;;  %v356_v2 = vsub.f32 %v323_v35, %v339_v49 }
 0x3a5   :  { %v342_v53 = vsub.f32 %v340_v51, %v341_v52 }
 0x3a7   :  { %v343_v55 = vmax.f32 %v342_v53, 0.0  ;;  %v458_v53 = vld [vmem:[#allocation8 + $0x20] sm:$0xff] }
 0x3a8   :  { %v465_v54 = vperm.slane %v458_v53, 0 }
 0x3a9   :  { %v344_v56 = vadd.f32 1e-05, %v343_v55 }
 0x3ab   :  { %746 = vrsqrt.f32 %v344_v56  ;;  %vm351_vm12 = vweird.f32 %v344_v56 }
 0x3b1   :  { %v747_v57 = vpop.eup %746 }
 0x3b2   :  { %v346_v58 = vmul.f32 %v747_v57, %v344_v56  ;;  %vm352_vm11 = vweird.f32 %v747_v57 }
 0x3b3   :  { %vm353_vm13 = vmor %vm351_vm12, %vm352_vm11 }
 0x3b4   :  { %v347_v59 = vmul.f32 %v747_v57, %v346_v58 }
 0x3b6   :  { %v348_v60 = vmul.f32 0.5, %v347_v59 }
 0x3b8   :  { %v349_v61 = vsub.f32 1.5, %v348_v60 }
 0x3ba   :  { %v350_v62 = vmul.f32 %v747_v57, %v349_v61 }
 0x3bc   :  { %v354_v63 = vsel %vm353_vm13, %v747_v57, %v350_v62 }
 0x3bd   :  { %v355_v0 = vmul.f32 %v354_v63, %v270_v30  ;;  %v729_v30 = vld [vmem:[#allocation7 + $0x48] sm:$0xff] }
 0x3be   :  { %487 = vmatpush.bf16.msrb.mxu2 %v729_v30 }
 0x3bf   :  { %v357_v3 = vperm.slane %v355_v0, 1 }
 0x3c1   :  { %v358_v4 = vmul.f32 %v357_v3, %v356_v2 }
 0x3c2   :  { %488 = vmatpush.bf16.msrb.mxu2 %v728_v34 }
 0x3c3   :  { %v360_v5 = vadd.f32 %v359_v1, %v358_v4 }
 0x3c5   :  { %v361_v6 = vmax.f32 %v360_v5, 0.0 }
 0x3c7   :  { %v362_v7 = vadd.f32 %v361_v6, %v268_v28 }
 0x3c9   :  { %v365_v8 = vpack.c.bf16 %v362_v7, %v362_v7 }
 0x3cb   :  { %699 = vmatmul.msk.bf16.vlgmr.msra.gmra.mxu3 %vm195_vm7, %v365_v8 }
 0x44e   :  { %v396_v12 = vpop.f32.mrf.mxu3 }
 0x44f   :  { %v397_v13 = vadd.f32 %v396_v12, %v371_v10 }
 0x451   :  { %415 = vmatpush.msrb.mxu3 %v397_v13 }
 0x452   :  { %700 = vmatmul.msk.f32.vlgmr.msrb.gmra.mxu3 %vm114_vm3, %v929_v11 }
 0x456   :  { %v398_v14 = vpop.f32.mrf.mxu3 }
 0x457   :  { %v730_v14 = vld [vmem:[#allocation7 + $0x50] sm:$0xff] }
 0x4d5   :  { %v417_v15 = vpop.f32.mrf.mxu3 }
 0x4d6   :  { %v420_v16 = vrot.slane %v417_v15, 4  ;;  %v426_v17 = vmul.f32 %v417_v15, %v417_v15 }
 0x4d8   :  { %v421_v18 = vadd.f32 %v420_v16, %v417_v15  ;;  %v427_v19 = vrot.slane %v426_v17, 4 }
 0x4da   :  { %v422_v20 = vrot.slane %v421_v18, 2  ;;  %v428_v21 = vadd.f32 %v427_v19, %v426_v17 }
 0x4dc   :  { %v423_v22 = vadd.f32 %v422_v20, %v421_v18  ;;  %v429_v23 = vrot.slane %v428_v21, 2 }
 0x4de   :  { %v424_v24 = vrot.slane %v423_v22, 1  ;;  %v430_v25 = vadd.f32 %v429_v23, %v428_v21 }
 0x4e0   :  { %v425_v26 = vadd.f32 %v424_v24, %v423_v22  ;;  %v431_v27 = vrot.slane %v430_v25, 1 }
 0x4e2   :  { %v432_v28 = vadd.f32 %v431_v27, %v430_v25  ;;  %v433_v29 = vmul.f32 0.125, %v425_v26  ;;  %v547_v25 = vperm.slane %v458_v53, 2 }
 0x4e4   :  { %v434_v31 = vmul.f32 0.125, %v432_v28  ;;  %v435_v32 = vmul.f32 %v433_v29, %v433_v29  ;;  %v450_v46 = vsub.f32 %v417_v15, %v433_v29 }
 0x4e6   :  { %v436_v33 = vsub.f32 %v434_v31, %v435_v32 }
 0x4e8   :  { %v437_v35 = vmax.f32 %v436_v33, 0.0  ;;  %v552_v33 = vld [vmem:[#allocation8 + $0x28] sm:$0xff] }
 0x4e9   :  { %v559_v34 = vperm.slane %v552_v33, 0 }
 0x4ea   :  { %v438_v36 = vadd.f32 1e-05, %v437_v35 }
 0x4ec   :  { %748 = vrsqrt.f32 %v438_v36  ;;  %vm445_vm15 = vweird.f32 %v438_v36 }
 0x4f2   :  { %v749_v37 = vpop.eup %748 }
 0x4f3   :  { %v440_v38 = vmul.f32 %v749_v37, %v438_v36  ;;  %vm446_vm14 = vweird.f32 %v749_v37 }
 0x4f4   :  { %vm447_vm0 = vmor %vm445_vm15, %vm446_vm14 }
 0x4f5   :  { %v441_v39 = vmul.f32 %v749_v37, %v440_v38 }
 0x4f7   :  { %v442_v40 = vmul.f32 0.5, %v441_v39 }
 0x4f9   :  { %v443_v41 = vsub.f32 1.5, %v442_v40 }
 0x4fb   :  { %v444_v42 = vmul.f32 %v749_v37, %v443_v41 }
 0x4fd   :  { %v448_v43 = vsel %vm447_vm0, %v749_v37, %v444_v42 }
 0x4fe   :  { %v449_v44 = vmul.f32 %v448_v43, %v364_v9  ;;  %v731_v9 = vld [vmem:[#allocation7 + $0x58] sm:$0xff] }
 0x4ff   :  { %581 = vmatpush.bf16.msrb.mxu0 %v731_v9 }
 0x500   :  { %v451_v47 = vperm.slane %v449_v44, 1 }
 0x502   :  { %v452_v48 = vmul.f32 %v451_v47, %v450_v46 }
 0x503   :  { %582 = vmatpush.bf16.msrb.mxu0 %v730_v14 }
 0x504   :  { %v454_v49 = vadd.f32 %v453_v45, %v452_v48 }
 0x506   :  { %v455_v50 = vmax.f32 %v454_v49, 0.0 }
 0x508   :  { %v456_v51 = vadd.f32 %v455_v50, %v362_v7 }
 0x50a   :  { %v459_v52 = vpack.c.bf16 %v456_v51, %v456_v51 }
 0x50c   :  { %709 = vmatmul.msk.bf16.vlgmr.msrb.gmra.mxu2 %vm195_vm7, %v459_v52 }
 0x58f   :  { %v490_v55 = vpop.f32.mrf.mxu2 }
 0x590   :  { %v491_v56 = vadd.f32 %v490_v55, %v465_v54 }
 0x592   :  { %509 = vmatpush.msra.mxu1 %v491_v56 }
 0x593   :  { %710 = vmatmul.msk.f32.vlgmr.msra.gmra.mxu1 %vm114_vm3, %v929_v11 }
 0x597   :  { %v492_v57 = vpop.f32.mrf.mxu2 }
 0x610   :  { %v511_v58 = vpop.f32.mrf.mxu1 }
 0x611   :  { %v514_v59 = vrot.slane %v511_v58, 4  ;;  %v520_v60 = vmul.f32 %v511_v58, %v511_v58 }
 0x613   :  { %v515_v61 = vadd.f32 %v514_v59, %v511_v58  ;;  %v521_v62 = vrot.slane %v520_v60, 4 }
 0x615   :  { %v516_v63 = vrot.slane %v515_v61, 2  ;;  %v522_v0 = vadd.f32 %v521_v62, %v520_v60 }
 0x617   :  { %v517_v1 = vadd.f32 %v516_v63, %v515_v61  ;;  %v523_v2 = vrot.slane %v522_v0, 2 }
 0x619   :  { %v518_v3 = vrot.slane %v517_v1, 1  ;;  %v524_v4 = vadd.f32 %v523_v2, %v522_v0 }
 0x61b   :  { %v519_v5 = vadd.f32 %v518_v3, %v517_v1  ;;  %v525_v6 = vrot.slane %v524_v4, 1  ;;  %v641_v1 = vperm.slane %v552_v33, 2 }
 0x61d   :  { %v526_v7 = vadd.f32 %v525_v6, %v524_v4  ;;  %v527_v8 = vmul.f32 0.125, %v519_v5 }
 0x61f   :  { %v528_v10 = vmul.f32 0.125, %v526_v7  ;;  %v529_v12 = vmul.f32 %v527_v8, %v527_v8  ;;  %v544_v26 = vsub.f32 %v511_v58, %v527_v8 }
 0x621   :  { %v530_v13 = vsub.f32 %v528_v10, %v529_v12 }
 0x623   :  { %v531_v15 = vmax.f32 %v530_v13, 0.0 }
 0x625   :  { %v532_v16 = vadd.f32 1e-05, %v531_v15 }
 0x627   :  { %750 = vrsqrt.f32 %v532_v16  ;;  %vm539_vm2 = vweird.f32 %v532_v16 }
 0x62d   :  { %v751_v17 = vpop.eup %750 }
 0x62e   :  { %v534_v18 = vmul.f32 %v751_v17, %v532_v16  ;;  %vm540_vm1 = vweird.f32 %v751_v17 }
 0x62f   :  { %vm541_vm4 = vmor %vm539_vm2, %vm540_vm1 }
 0x630   :  { %v535_v19 = vmul.f32 %v751_v17, %v534_v18 }
 0x632   :  { %v536_v20 = vmul.f32 0.5, %v535_v19 }
 0x634   :  { %v537_v21 = vsub.f32 1.5, %v536_v20 }
 0x636   :  { %v538_v22 = vmul.f32 %v751_v17, %v537_v21 }
 0x638   :  { %v542_v23 = vsel %vm541_vm4, %v751_v17, %v538_v22 }
 0x639   :  { %v543_v24 = vmul.f32 %v542_v23, %v458_v53 }
 0x63b   :  { %v545_v27 = vperm.slane %v543_v24, 1 }
 0x63d   :  { %v546_v28 = vmul.f32 %v545_v27, %v544_v26 }
 0x63f   :  { %v548_v29 = vadd.f32 %v547_v25, %v546_v28 }
 0x641   :  { %v549_v30 = vmax.f32 %v548_v29, 0.0 }
 0x643   :  { %v550_v31 = vadd.f32 %v549_v30, %v456_v51 }
 0x645   :  { %v553_v32 = vpack.c.bf16 %v550_v31, %v550_v31 }
 0x647   :  { %719 = vmatmul.msk.bf16.vlgmr.msrb.gmra.mxu0 %vm195_vm7, %v553_v32 }
 0x6c4   :  { %v584_v35 = vpop.f32.mrf.mxu0 }
 0x6c5   :  { %v585_v36 = vadd.f32 %v584_v35, %v559_v34 }
 0x6c7   :  { %603 = vmatpush.msrb.mxu1 %v585_v36 }
 0x6c8   :  { %720 = vmatmul.msk.f32.vlgmr.msrb.gmra.mxu1 %vm114_vm3, %v929_v11 }
 0x6cc   :  { %v586_v37 = vpop.f32.mrf.mxu0 }
 0x745   :  { %v605_v38 = vpop.f32.mrf.mxu1 }
 0x746   :  { %v608_v39 = vrot.slane %v605_v38, 4  ;;  %v614_v40 = vmul.f32 %v605_v38, %v605_v38 }
 0x748   :  { %v609_v41 = vadd.f32 %v608_v39, %v605_v38  ;;  %v615_v42 = vrot.slane %v614_v40, 4 }
 0x74a   :  { %v610_v43 = vrot.slane %v609_v41, 2  ;;  %v616_v44 = vadd.f32 %v615_v42, %v614_v40 }
 0x74c   :  { %v611_v45 = vadd.f32 %v610_v43, %v609_v41  ;;  %v617_v46 = vrot.slane %v616_v44, 2 }
 0x74e   :  { %v612_v47 = vrot.slane %v611_v45, 1  ;;  %v618_v48 = vadd.f32 %v617_v46, %v616_v44 }
 0x750   :  { %v613_v49 = vadd.f32 %v612_v47, %v611_v45  ;;  %v619_v50 = vrot.slane %v618_v48, 1 }
 0x752   :  { %v620_v51 = vadd.f32 %v619_v50, %v618_v48  ;;  %v621_v52 = vmul.f32 0.125, %v613_v49 }
 0x754   :  { %v622_v53 = vmul.f32 0.125, %v620_v51  ;;  %v623_v54 = vmul.f32 %v621_v52, %v621_v52  ;;  %v638_v2 = vsub.f32 %v605_v38, %v621_v52 }
 0x756   :  { %v624_v55 = vsub.f32 %v622_v53, %v623_v54 }
 0x758   :  { %v625_v11 = vmax.f32 %v624_v55, 0.0 }
 0x75a   :  { %v626_v56 = vadd.f32 1e-05, %v625_v11 }
 0x75c   :  { %752 = vrsqrt.f32 %v626_v56  ;;  %vm633_vm5 = vweird.f32 %v626_v56 }
 0x762   :  { %v753_v57 = vpop.eup %752 }
 0x763   :  { %v628_v58 = vmul.f32 %v753_v57, %v626_v56  ;;  %vm634_vm3 = vweird.f32 %v753_v57 }
 0x764   :  { %vm635_vm6 = vmor %vm633_vm5, %vm634_vm3 }
 0x765   :  { %v629_v59 = vmul.f32 %v753_v57, %v628_v58 }
 0x767   :  { %v630_v60 = vmul.f32 0.5, %v629_v59 }
 0x769   :  { %v631_v61 = vsub.f32 1.5, %v630_v60 }
 0x76b   :  { %v632_v62 = vmul.f32 %v753_v57, %v631_v61 }
 0x76d   :  { %v636_v63 = vsel %vm635_vm6, %v753_v57, %v632_v62 }
 0x76e   :  { %v637_v0 = vmul.f32 %v636_v63, %v552_v33 }
 0x770   :  { %v639_v3 = vperm.slane %v637_v0, 1 }
 0x772   :  { %v640_v4 = vmul.f32 %v639_v3, %v638_v2 }
 0x774   :  { %v642_v5 = vadd.f32 %v641_v1, %v640_v4 }
 0x776   :  { %v643_v6 = vmax.f32 %v642_v5, 0.0 }
 0x778   :  { %v644_v7 = vadd.f32 %v643_v6, %v550_v31 }
 0x77a   :  { %645 = vst.msk [vmem:[#allocation10] sm:$0xff] %vm195_vm7, %v644_v7 }
 0x77b   :  { %656 = dma.vmem_to_hbm [thread:$0]  %s652_s3, 128, %s654_s13, [#allocation4]  }
 0x77c   :  { %880 = dma.done.wait [#allocation4], 128  }
 0x77d   :  { %881 = vsyncadd [#allocation4], 4294967168 }
 0x77e   :  { %661 = vsyncpa [#allocation3], 1 }
 0x77f   :  { %662 = vsyncpa [#allocation6], 1 }
 0x780   :  { %663 = vsyncpa [#allocation9], 1 }
 0x781   :  { %664 = vsyncpa [#allocation4], 1 }

</bundles_post_ra>
